<compile_context>
chip_gen: v7x
topology: tpu7x:2x2x1
jax: 0.10.0
libtpu: 0.0.40
codegen_flags: <defaults>
</compile_context>

<pallas_src>
import functools
import math

import jax
import jax.numpy as jnp
import numpy as np
from jax.experimental import pallas as pl
from jax.experimental.pallas import tpu as pltpu


# ----------------------------------------------------------------------------
# Buffer setup (mirrors PyTorch __init__).  NOTE: assumes even d_model, like
# the common PyTorch implementation.
# ----------------------------------------------------------------------------
def make_positional_encoding(d_model: int, max_len: int = 5000) -> jnp.ndarray:
    position = jnp.arange(max_len, dtype=jnp.float32)[:, None]            # (L, 1)
    div_term = jnp.exp(
        jnp.arange(0, d_model, 2, dtype=jnp.float32)
        * -(math.log(10000.0) / d_model)
    )                                                                      # (D/2,)
    pe = jnp.zeros((max_len, 1, d_model), dtype=jnp.float32)
    pe = pe.at[:, 0, 0::2].set(jnp.sin(position * div_term))
    pe = pe.at[:, 0, 1::2].set(jnp.cos(position * div_term))
    return pe                                                              # (L, 1, D)


# ----------------------------------------------------------------------------
# Kernels (2-D, lane-dense blocks: (tile_s, B*D))
# ----------------------------------------------------------------------------
def pe_add_kernel(x_ref, pe_ref, o_ref):
    o_ref[...] = x_ref[...] + pe_ref[...]


def pe_add_dropout_kernel(x_ref, pe_ref, bits_ref, o_ref, *,
                          keep_threshold: int, inv_keep: float):
    # Inverted dropout: keep iff uniform uint32 < (1-p)*2^32, scale kept by 1/(1-p).
    y = x_ref[...] + pe_ref[...]
    keep = bits_ref[...] < jnp.uint32(keep_threshold)
    o_ref[...] = jnp.where(keep, y * jnp.float32(inv_keep),
                           jnp.float32(0.0)).astype(o_ref.dtype)


# ----------------------------------------------------------------------------
# Wrapper
# ----------------------------------------------------------------------------
def _pick_tile_s(S: int, row_bytes: int,
                 target_block_bytes: int = 2 * 1024 * 1024) -> int:
    """Largest multiple-of-8 row count whose block fits the byte budget."""
    rows = max(8, (target_block_bytes // max(1, row_bytes)) // 8 * 8)
    tile_s = min(S, rows)
    if tile_s != S:
        tile_s = max(8, (tile_s // 8) * 8)   # second-to-last dim: mult. of 8 or full
    return tile_s


def positional_encoding_forward(x, pe, *, dropout_p: float = 0.1,
                                training: bool = False, rng_key=None):
    """x: (S, B, D); pe: (max_len, 1, D).  Returns (S, B, D)."""
    S, B, D = x.shape
    BD = B * D

    # Lane-dense layout: flatten (B, D) into one last axis; broadcast pe over
    # batch once in the wrapper (cheap XLA op) so the kernel is a plain 2-D add.
    x2d = x.reshape(S, BD)
    pe2d = jnp.broadcast_to(pe[:S].astype(x.dtype), (S, B, D)).reshape(S, BD)

    tile_s = _pick_tile_s(S, BD * x.dtype.itemsize)
    grid = (pl.cdiv(S, tile_s),)
    block = pl.BlockSpec((tile_s, BD), lambda i: (i, 0))

    use_dropout = training and dropout_p > 0.0
    n_streams = 4 if use_dropout else 3           # x, pe, (bits), out
    block_bytes = tile_s * BD * 4
    vmem_limit = int(min(96 * 1024 * 1024,
                         max(4 * 1024 * 1024,
                             2 * n_streams * block_bytes + (1 << 20))))
    cparams = pltpu.CompilerParams(
        dimension_semantics=("parallel",),        # tiles independent -> both TCs on v7x
        vmem_limit_bytes=vmem_limit,
    )

    if not use_dropout:
        out2d = pl.pallas_call(
            pe_add_kernel,
            out_shape=jax.ShapeDtypeStruct((S, BD), x.dtype),
            grid_spec=pl.GridSpec(grid=grid,
                                  in_specs=[block, block],
                                  out_specs=block),
            compiler_params=cparams,
        )(x2d, pe2d)
        return out2d.reshape(S, B, D)

    if dropout_p >= 1.0:
        return jnp.zeros_like(x)

    if rng_key is None:
        rng_key = jax.random.PRNGKey(0)
    # TODO(synk): pltpu.prng_random_bits would avoid this extra HBM stream, but
    # the stateful TPU PRNG has no interpreter lowering; bits come from jax.random.
    bits = jax.random.bits(rng_key, (S, BD), dtype=jnp.uint32)
    keep_threshold = min(int(round((1.0 - dropout_p) * 2.0 ** 32)), 2 ** 32 - 1)
    inv_keep = 1.0 / (1.0 - dropout_p)

    kernel = functools.partial(pe_add_dropout_kernel,
                               keep_threshold=keep_threshold, inv_keep=inv_keep)
    out2d = pl.pallas_call(
        kernel,
        out_shape=jax.ShapeDtypeStruct((S, BD), x.dtype),
        grid_spec=pl.GridSpec(grid=grid,
                              in_specs=[block, block, block],
                              out_specs=block),
        compiler_params=cparams,
    )(x2d, pe2d, bits)
    return out2d.reshape(S, B, D)


# ----------------------------------------------------------------------------
# Main
# ----------------------------------------------------------------------------
if __name__ == "__main__":
    key = jax.random.PRNGKey(0)
    kx, kd = jax.random.split(key)

    S, B, D = 8, 4, 32          # seq_len, batch, d_model  (B*D = 128 lanes)
    MAX_LEN = 64
    x = jax.random.normal(kx, (S, B, D), dtype=jnp.float32)
    pe = make_positional_encoding(D, max_len=MAX_LEN)

    # Eval mode: dropout is identity; fully deterministic.
    out_eval = jax.block_until_ready(
        positional_encoding_forward(x, pe, training=False))
    ref = x + pe[:S]
    np.testing.assert_allclose(np.asarray(out_eval), np.asarray(ref),
                               rtol=1e-6, atol=1e-6)

    # Training mode: fused add + inverted dropout (p = 0.1).
    p = 0.1
    out_train = jax.block_until_ready(
        positional_encoding_forward(x, pe, dropout_p=p, training=True,
                                    rng_key=kd))
    assert out_train.shape == (S, B, D)
    out_np = np.asarray(out_train)
    scaled_ref = np.asarray(ref) / (1.0 - p)
    kept = out_np != 0.0
    np.testing.assert_allclose(out_np[kept], scaled_ref[kept],
                               rtol=1e-5, atol=1e-5)

    print("KERNEL_OK")
</pallas_src>

<mosaic_0001>
module attributes {stable_mosaic.version = 11 : i64} {
  func.func @pe_add_kernel(%arg0: i32, %arg1: memref<8x128xf32, #tpu.memory_space<vmem>>, %arg2: memref<8x128xf32, #tpu.memory_space<vmem>>, %arg3: memref<8x128xf32, #tpu.memory_space<vmem>>) attributes {dimension_semantics = [#tpu.dimension_semantics<parallel>], iteration_bounds = array<i64: 1>, scalar_prefetch = 0 : i64, scratch_operands = 0 : i64, tpu.core_type = #tpu.core_type<tc>, window_params = [{transform_indices = @transform_0, window_bounds = array<i64: 8, 128>}, {transform_indices = @transform_1, window_bounds = array<i64: 8, 128>}, {transform_indices = @transform_2, window_bounds = array<i64: 8, 128>}]} {
    %c0 = arith.constant 0 : index
    %c0_0 = arith.constant 0 : index
    %0 = vector.load %arg1[%c0, %c0_0] : memref<8x128xf32, #tpu.memory_space<vmem>>, vector<8x128xf32>
    %c0_1 = arith.constant 0 : index
    %c0_2 = arith.constant 0 : index
    %1 = vector.load %arg2[%c0_1, %c0_2] : memref<8x128xf32, #tpu.memory_space<vmem>>, vector<8x128xf32>
    %2 = arith.addf %0, %1 : vector<8x128xf32>
    %c0_3 = arith.constant 0 : index
    %c0_4 = arith.constant 0 : index
    %3 = vector.load %arg3[%c0_3, %c0_4] : memref<8x128xf32, #tpu.memory_space<vmem>>, vector<8x128xf32>
    tpu.vector_store %arg3[%c0_3, %c0_4], %2 {strides = array<i32>} : memref<8x128xf32, #tpu.memory_space<vmem>>, vector<8x128xf32>,
    return
  }
  func.func @transform_0(%arg0: i32) -> (i32, i32) {
    %c0_i32 = arith.constant 0 : i32
    %c0_i32_0 = arith.constant 0 : i32
    return %arg0, %c0_i32 : i32, i32
  }
  func.func @transform_1(%arg0: i32) -> (i32, i32) {
    %c0_i32 = arith.constant 0 : i32
    %c0_i32_0 = arith.constant 0 : i32
    return %arg0, %c0_i32 : i32, i32
  }
  func.func @transform_2(%arg0: i32) -> (i32, i32) {
    %c0_i32 = arith.constant 0 : i32
    %c0_i32_0 = arith.constant 0 : i32
    return %arg0, %c0_i32 : i32, i32
  }
}

</mosaic_0001>

<bundles_post_ra>
// kernel: tpu_custom_call.1
= control target key start
LH: loop header
LB: loop body
LE: loop exit
PB: predicated region body
PF: predicated region fallthrough
CT: control target
= control target key end

     0   :  { %7 = vsyncpa [#allocation3], 0  ;;  %s185_s0 = inlined_call_operand.hbm [shape: f32[8,128], index: 0, kind: input, shape index: {}]   ;;  %s186_s1 = inlined_call_operand.hbm [shape: f32[8,128], index: 1, kind: input, shape index: {}]   ;;  %s187_s2 = inlined_call_operand.hbm [shape: f32[8,128], index: 2, kind: output, shape index: {}]  }
   0x1   :  { %8 = vsyncpa [#allocation6], 0 }
   0x2   :  { %9 = vsyncpa [#allocation4], 0  ;;  %s131_s9 = smov [#allocation2]   ;;  %s132_s11 = smov [#allocation5]  }
   0x3   :  { %s16_s10 = sshll.u32 %s131_s9, 4  ;;  %s26_s12 = sshll.u32 %s132_s11, 4  ;;  %s17_s10 = int_to_ptr.vmem [resolvable:$true] %s16_s10  ;;  %s27_s12 = int_to_ptr.vmem [resolvable:$true] %s26_s12 }
   0x4   :  { %s59_s15 = scalar_lea.hbm %s185_s0, 128 }
   0x5   :  { %p60_p0 = scmp.ne.s32.totalorder %s185_s0, %s59_s15  ;;  %p63_p1 = scmp.lt.u32.totalorder %s59_s15, %s185_s0 }
   0x7   :  { %p65_p2 = pnand %p63_p1, %p60_p0 }
   0x9   :  { %68 = shalt.err (!%p65_p2)
}
   0xa   :  { %s69_s20 = scalar_lea.vmem %s17_s10, 128  ;;  %p74_p4 = scmp.lt.s32.totalorder %s17_s10, %s17_s10 }
   0xb   :  { %p70_p3 = scmp.ne.s32.totalorder %s17_s10, %s69_s20  ;;  %p75_p5 = scmp.lt.s32.totalorder %s69_s20, %s69_s20 }
   0xd   :  { %p76_p6 = por %p75_p5, %p74_p4 }
   0xf   :  { %p77_p7 = pnand %p76_p6, %p70_p3 }
  0x11   :  { %80 = shalt.err (!%p77_p7)
}
  0x12   :  { %19 = dma.hbm_to_vmem [thread:$0]  %s185_s0, 128, %s17_s10, [#allocation3]  }
  0x13   :  { %s81_s25 = scalar_lea.hbm %s186_s1, 128 }
  0x14   :  { %p82_p8 = scmp.ne.s32.totalorder %s186_s1, %s81_s25  ;;  %p85_p9 = scmp.lt.u32.totalorder %s81_s25, %s186_s1 }
  0x16   :  { %p87_p10 = pnand %p85_p9, %p82_p8 }
  0x18   :  { %90 = shalt.err (!%p87_p10)
}
  0x19   :  { %s91_s30 = scalar_lea.vmem %s27_s12, 128  ;;  %p96_p12 = scmp.lt.s32.totalorder %s27_s12, %s27_s12 }
  0x1a   :  { %p92_p11 = scmp.ne.s32.totalorder %s27_s12, %s91_s30  ;;  %p97_p13 = scmp.lt.s32.totalorder %s91_s30, %s91_s30 }
  0x1c   :  { %p98_p0 = por %p97_p13, %p96_p12 }
  0x1e   :  { %p99_p1 = pnand %p98_p0, %p92_p11 }
  0x20   :  { %102 = shalt.err (!%p99_p1)
}
  0x21   :  { %29 = dma.hbm_to_vmem [thread:$0]  %s186_s1, 128, %s27_s12, [#allocation6]  }
  0x22   :  { %125 = dma.done.wait [#allocation3], 128  }
  0x23   :  { %126 = vsyncadd [#allocation3], 4294967168 }
  0x24   :  { %127 = dma.done.wait [#allocation6], 128  }
  0x25   :  { %128 = vsyncadd [#allocation6], 4294967168  ;;  %s133_s4 = smov [#allocation7]   ;;  %v36_v0 = vld [vmem:[#allocation2] sm:$0xff]  ;;  %v37_v1 = vld [vmem:[#allocation5] sm:$0xff] }
  0x26   :  { %s46_s5 = sshll.u32 %s133_s4, 4  ;;  %v38_v2 = vadd.f32 %v37_v1, %v36_v0  ;;  %s47_s5 = int_to_ptr.vmem [resolvable:$true] %s46_s5 }
  0x27   :  { %s103_s6 = scalar_lea.vmem %s47_s5, 128  ;;  %p108_p3 = scmp.lt.s32.totalorder %s47_s5, %s47_s5 }
  0x28   :  { %39 = vst [vmem:[#allocation7] sm:$0xff] %v38_v2  ;;  %p104_p2 = scmp.ne.s32.totalorder %s47_s5, %s103_s6  ;;  %p109_p4 = scmp.lt.s32.totalorder %s103_s6, %s103_s6 }
  0x2a   :  { %p110_p5 = por %p109_p4, %p108_p3 }
  0x2c   :  { %p111_p6 = pnand %p110_p5, %p104_p2 }
  0x2e   :  { %114 = shalt.err (!%p111_p6)
}
  0x2f   :  { %s115_s8 = scalar_lea.hbm %s187_s2, 128 }
  0x30   :  { %p116_p7 = scmp.ne.s32.totalorder %s187_s2, %s115_s8  ;;  %p119_p8 = scmp.lt.u32.totalorder %s115_s8, %s187_s2 }
  0x32   :  { %p121_p9 = pnand %p119_p8, %p116_p7 }
  0x34   :  { %124 = shalt.err (!%p121_p9)
}
  0x35   :  { %49 = dma.vmem_to_hbm [thread:$0]  %s47_s5, 128, %s187_s2, [#allocation4]  }
  0x36   :  { %129 = dma.done.wait [#allocation4], 128  }
  0x37   :  { %130 = vsyncadd [#allocation4], 4294967168 }
  0x38   :  { %53 = vsyncpa [#allocation3], 1 }
  0x39   :  { %54 = vsyncpa [#allocation6], 1 }
  0x3a   :  { %55 = vsyncpa [#allocation4], 1 }

</bundles_post_ra>
